<compile_context>
chip_gen: v6e
topology: v6e:2x2x1
jax: 0.10.0
libtpu: 0.0.40
codegen_flags: <defaults>
</compile_context>

<pallas_src>
import functools
import math

import jax
import jax.numpy as jnp
from jax.experimental import pallas as pl
from jax.experimental.pallas import tpu as pltpu


def _conv3x3_s2_kernel(pf_ref, w_ref, b_ref, o_ref, acc_ref, *, mb, owp):
    """Fused 3x3 / stride-2 conv tile: 9 shifted GEMMs accumulated in f32.

    pf_ref : (2, 2, Rb, tci)  stride-phase-decomposed, spatially flattened input
    w_ref  : (3, 3, tci, tco) weights in (kh, kw, ci, co) order
    b_ref  : (1, tco)         bias (f32)
    o_ref  : (MB, tco)        output tile (flattened padded spatial x C_out tile)
    acc_ref: (MB, tco) f32    accumulator, persists across the C_in grid axis
    """
    k = pl.program_id(3)

    @pl.when(k == 0)
    def _init():
        # Fold the bias into the accumulator init (no separate epilogue add).
        acc_ref[...] = jnp.broadcast_to(
            b_ref[...].astype(jnp.float32), acc_ref.shape)

    acc = acc_ref[...]
    for kh in range(3):
        for kw in range(3):
            # Static shift in flattened (phase_row * OWp + phase_col) space.
            off = (kh // 2) * owp + (kw // 2)
            slab = pf_ref[kh % 2, kw % 2, pl.ds(off, mb), :]
            acc += jnp.dot(slab, w_ref[kh, kw, :, :],
                           preferred_element_type=jnp.float32)
    acc_ref[...] = acc

    @pl.when(k == pl.num_programs(3) - 1)
    def _store():
        o_ref[...] = acc_ref[...].astype(o_ref.dtype)


def _channel_tile(c, max_tile=256):
    """Full dim if small, else the largest 128-multiple divisor <= max_tile."""
    if c <= max_tile:
        return c
    for t in range(max_tile, 127, -128):
        if c % t == 0:
            return t
    return c  # fall back to full dim (always a legal block)


def downsample_conv(x_nchw, weight_oihw, bias, *, stride=2, padding=1,
                    compute_dtype=None):
    """Equivalent of Downsample(channels, method='conv').forward(x).

    compute_dtype: optionally cast MXU operands (e.g. jnp.bfloat16 on v6e/v7x
    for higher MXU throughput); accumulation stays in f32 either way.
    """
    N, C_in_x, H, W = x_nchw.shape
    C_out, C_in, KH, KW = weight_oihw.shape
    assert C_in == C_in_x
    assert (KH, KW) == (3, 3) and stride == 2 and padding == 1

    OH = (H + 2 * padding - KH) // stride + 1
    OW = (W + 2 * padding - KW) // stride + 1
    OWp = OW + 1                      # one padded (garbage) output column per row

    # ---- tiling ----------------------------------------------------------
    t_oh = max(1, min(OH, max(1, 512 // OWp)))   # ~512 flattened rows per M tile
    n_rb = -(-OH // t_oh)                        # output-row blocks
    OH_pad = n_rb * t_oh
    MB = t_oh * OWp                              # flat output rows per tile
    Rb = (t_oh + 2) * OWp                        # flat phase rows per tile (+halo)

    tci = _channel_tile(C_in)
    tco = _channel_tile(C_out)
    n_ci = C_in // tci
    n_co = C_out // tco

    cdt = x_nchw.dtype if compute_dtype is None else jnp.dtype(compute_dtype)

    # ---- layout glue (one relayout pass; NO 9x im2col blow-up) -----------
    x = jnp.transpose(x_nchw, (0, 2, 3, 1)).astype(cdt)           # NHWC
    pad_b = 2 * (OH_pad + 2) - H - padding
    pad_r = 2 * OWp - W - padding
    x = jnp.pad(x, ((0, 0), (padding, pad_b), (padding, pad_r), (0, 0)))
    # stride-2 phase decomposition: x_pad[2i+rp, 2j+cp] -> phases[rp, cp, i, j]
    phases = x.reshape(N, OH_pad + 2, 2, OWp, 2, C_in).transpose(0, 2, 4, 1, 3, 5)
    # overlapping row blocks (1-row halo + 1 safety row), spatial flattened
    pf = jnp.stack(
        [phases[:, :, :, b * t_oh: b * t_oh + t_oh + 2] for b in range(n_rb)],
        axis=1,
    ).reshape(N, n_rb, 2, 2, Rb, C_in)

    # weights in (kh, kw, ci, co) order; bias as an f32 (1, C_out) row
    w_taps = jnp.transpose(weight_oihw, (2, 3, 1, 0)).astype(cdt)
    b_row = bias.reshape(1, C_out).astype(jnp.float32)

    isz = jnp.dtype(cdt).itemsize
    osz = jnp.dtype(x_nchw.dtype).itemsize
    cost = pl.CostEstimate(
        flops=2 * 9 * N * n_rb * MB * C_in * C_out,
        transcendentals=0,
        bytes_accessed=(N * n_rb * 4 * Rb * C_in + 9 * C_in * C_out) * isz
        + C_out * 4 + N * n_rb * MB * C_out * osz,
    )

    kernel = functools.partial(_conv3x3_s2_kernel, mb=MB, owp=OWp)

    out = pl.pallas_call(
        kernel,
        out_shape=jax.ShapeDtypeStruct((N, n_rb, MB, C_out), x_nchw.dtype),
        grid_spec=pltpu.PrefetchScalarGridSpec(
            num_scalar_prefetch=0,
            grid=(N, n_rb, n_co, n_ci),
            in_specs=[
                pl.BlockSpec((None, None, 2, 2, Rb, tci),
                             lambda n, m, j, k: (n, m, 0, 0, 0, k)),
                pl.BlockSpec((3, 3, tci, tco),
                             lambda n, m, j, k: (0, 0, k, j)),
                pl.BlockSpec((1, tco),
                             lambda n, m, j, k: (0, j)),
            ],
            out_specs=pl.BlockSpec((None, None, MB, tco),
                                   lambda n, m, j, k: (n, m, 0, j)),
            scratch_shapes=[pltpu.VMEM((MB, tco), jnp.float32)],
        ),
        compiler_params=pltpu.CompilerParams(
            dimension_semantics=("parallel", "parallel", "parallel", "arbitrary"),
        ),
        cost_estimate=cost,
    )(pf, w_taps, b_row)

    # un-flatten, drop garbage column / padded rows, back to NCHW (module API)
    out = out.reshape(N, OH_pad, OWp, C_out)[:, :OH, :OW, :]
    return jnp.transpose(out, (0, 3, 1, 2))


if __name__ == "__main__":
    # Deterministic parameters (shapes from nn.Conv2d(C, C, 3, stride=2, padding=1)).
    channels = 4
    key = jax.random.PRNGKey(0)
    k_w, k_b, k_x = jax.random.split(key, 3)

    fan_in = channels * 3 * 3
    bound = 1.0 / math.sqrt(fan_in)
    weight = jax.random.uniform(
        k_w, (channels, channels, 3, 3), jnp.float32, minval=-bound, maxval=bound
    )
    bias = jax.random.uniform(
        k_b, (channels,), jnp.float32, minval=-bound, maxval=bound
    )

    # Input (NCHW), small shape consistent with the module.
    x = jax.random.normal(k_x, (2, channels, 16, 16), jnp.float32)

    y = jax.jit(downsample_conv)(x, weight, bias)
    y = jax.block_until_ready(y)
    assert y.shape == (2, channels, 8, 8), y.shape

    # Sanity check against XLA's native conv (same semantics as nn.Conv2d).
    y_ref = jax.lax.conv_general_dilated(
        x, weight, window_strides=(2, 2), padding=((1, 1), (1, 1)),
        dimension_numbers=("NCHW", "OIHW", "NCHW"),
    ) + bias.reshape(1, channels, 1, 1)
    assert jnp.allclose(y, y_ref, atol=1e-4, rtol=1e-4), float(
        jnp.max(jnp.abs(y - y_ref))
    )

    print("KERNEL_OK")
</pallas_src>

<mosaic_0001>
module attributes {stable_mosaic.version = 11 : i64} {
  func.func @_conv3x3_s2_kernel(%arg0: i32, %arg1: i32, %arg2: i32, %arg3: i32, %arg4: memref<1x1x2x2x90x4xf32, #tpu.memory_space<vmem>>, %arg5: memref<3x3x4x4xf32, #tpu.memory_space<vmem>>, %arg6: memref<1x4xf32, #tpu.memory_space<vmem>>, %arg7: memref<1x1x72x4xf32, #tpu.memory_space<vmem>>, %arg8: memref<72x4xf32, #tpu.memory_space<vmem>>) attributes {dimension_semantics = [#tpu.dimension_semantics<parallel>, #tpu.dimension_semantics<parallel>, #tpu.dimension_semantics<parallel>, #tpu.dimension_semantics<arbitrary>], iteration_bounds = array<i64: 2, 1, 1, 1>, scalar_prefetch = 0 : i64, scratch_operands = 1 : i64, tpu.core_type = #tpu.core_type<tc>, window_params = [{transform_indices = @transform_0, window_bounds = array<i64: 1, 1, 2, 2, 90, 4>}, {transform_indices = @transform_1, window_bounds = array<i64: 3, 3, 4, 4>}, {transform_indices = @transform_2, window_bounds = array<i64: 1, 4>}, {transform_indices = @transform_3, window_bounds = array<i64: 1, 1, 72, 4>}]} {
    %c0_i32 = arith.constant 0 : i32
    %0 = arith.cmpi eq, %arg3, %c0_i32 : i32
    %1 = arith.extui %0 : i1 to i32
    %c0_i32_0 = arith.constant 0 : i32
    %2 = arith.cmpi ne, %1, %c0_i32_0 : i32
    scf.if %2 {
      %c0_100 = arith.constant 0 : index
      %c0_101 = arith.constant 0 : index
      %62 = vector.load %arg6[%c0_100, %c0_101] : memref<1x4xf32, #tpu.memory_space<vmem>>, vector<1x4xf32>
      %63 = vector.shape_cast %62 : vector<1x4xf32> to vector<1x4xf32>
      %64 = vector.broadcast %63 : vector<1x4xf32> to vector<72x4xf32>
      %c0_102 = arith.constant 0 : index
      %c0_103 = arith.constant 0 : index
      %65 = vector.load %arg8[%c0_102, %c0_103] : memref<72x4xf32, #tpu.memory_space<vmem>>, vector<72x4xf32>
      tpu.vector_store %arg8[%c0_102, %c0_103], %64 {strides = array<i32>} : memref<72x4xf32, #tpu.memory_space<vmem>>, vector<72x4xf32>,
    } else {
    }
    %c0 = arith.constant 0 : index
    %c0_1 = arith.constant 0 : index
    %3 = vector.load %arg8[%c0, %c0_1] : memref<72x4xf32, #tpu.memory_space<vmem>>, vector<72x4xf32>
    %c0_2 = arith.constant 0 : index
    %c0_3 = arith.constant 0 : index
    %c0_4 = arith.constant 0 : index
    %c0_5 = arith.constant 0 : index
    %c0_6 = arith.constant 0 : index
    %c0_7 = arith.constant 0 : index
    %4 = vector.load %arg4[%c0_2, %c0_3, %c0_4, %c0_5, %c0_6, %c0_7] : memref<1x1x2x2x90x4xf32, #tpu.memory_space<vmem>>, vector<1x1x1x1x72x4xf32>
    %5 = vector.shape_cast %4 : vector<1x1x1x1x72x4xf32> to vector<72x4xf32>
    %c0_8 = arith.constant 0 : index
    %c0_9 = arith.constant 0 : index
    %c0_10 = arith.constant 0 : index
    %c0_11 = arith.constant 0 : index
    %6 = vector.load %arg5[%c0_8, %c0_9, %c0_10, %c0_11] : memref<3x3x4x4xf32, #tpu.memory_space<vmem>>, vector<1x1x4x4xf32>
    %7 = vector.shape_cast %6 : vector<1x1x4x4xf32> to vector<4x4xf32>
    %cst = arith.constant dense<0.000000e+00> : vector<72x4xf32>
    %8 = tpu.matmul %5, %7, %cst {dimension_numbers = #tpu.dot_dimension_numbers<[1], [0], [0], [1], [0, 0, 1, 1], [], []>} : vector<72x4xf32>, vector<4x4xf32>, vector<72x4xf32> -> vector<72x4xf32>
    %9 = arith.addf %3, %8 : vector<72x4xf32>
    %c0_12 = arith.constant 0 : index
    %c0_13 = arith.constant 0 : index
    %c0_14 = arith.constant 0 : index
    %c1 = arith.constant 1 : index
    %c0_15 = arith.constant 0 : index
    %c0_16 = arith.constant 0 : index
    %10 = vector.load %arg4[%c0_12, %c0_13, %c0_14, %c1, %c0_15, %c0_16] : memref<1x1x2x2x90x4xf32, #tpu.memory_space<vmem>>, vector<1x1x1x1x72x4xf32>
    %11 = vector.shape_cast %10 : vector<1x1x1x1x72x4xf32> to vector<72x4xf32>
    %c0_17 = arith.constant 0 : index
    %c1_18 = arith.constant 1 : index
    %c0_19 = arith.constant 0 : index
    %c0_20 = arith.constant 0 : index
    %12 = vector.load %arg5[%c0_17, %c1_18, %c0_19, %c0_20] : memref<3x3x4x4xf32, #tpu.memory_space<vmem>>, vector<1x1x4x4xf32>
    %13 = vector.shape_cast %12 : vector<1x1x4x4xf32> to vector<4x4xf32>
    %cst_21 = arith.constant dense<0.000000e+00> : vector<72x4xf32>
    %14 = tpu.matmul %11, %13, %cst_21 {dimension_numbers = #tpu.dot_dimension_numbers<[1], [0], [0], [1], [0, 0, 1, 1], [], []>} : vector<72x4xf32>, vector<4x4xf32>, vector<72x4xf32> -> vector<72x4xf32>
    %15 = arith.addf %9, %14 : vector<72x4xf32>
    %c0_22 = arith.constant 0 : index
    %c0_23 = arith.constant 0 : index
    %c0_24 = arith.constant 0 : index
    %c0_25 = arith.constant 0 : index
    %c1_26 = arith.constant 1 : index
    %c0_27 = arith.constant 0 : index
    %16 = vector.load %arg4[%c0_22, %c0_23, %c0_24, %c0_25, %c1_26, %c0_27] : memref<1x1x2x2x90x4xf32, #tpu.memory_space<vmem>>, vector<1x1x1x1x72x4xf32>
    %17 = vector.shape_cast %16 : vector<1x1x1x1x72x4xf32> to vector<72x4xf32>
    %c0_28 = arith.constant 0 : index
    %c2 = arith.constant 2 : index
    %c0_29 = arith.constant 0 : index
    %c0_30 = arith.constant 0 : index
    %18 = vector.load %arg5[%c0_28, %c2, %c0_29, %c0_30] : memref<3x3x4x4xf32, #tpu.memory_space<vmem>>, vector<1x1x4x4xf32>
    %19 = vector.shape_cast %18 : vector<1x1x4x4xf32> to vector<4x4xf32>
    %cst_31 = arith.constant dense<0.000000e+00> : vector<72x4xf32>
    %20 = tpu.matmul %17, %19, %cst_31 {dimension_numbers = #tpu.dot_dimension_numbers<[1], [0], [0], [1], [0, 0, 1, 1], [], []>} : vector<72x4xf32>, vector<4x4xf32>, vector<72x4xf32> -> vector<72x4xf32>
    %21 = arith.addf %15, %20 : vector<72x4xf32>
    %c0_32 = arith.constant 0 : index
    %c0_33 = arith.constant 0 : index
    %c1_34 = arith.constant 1 : index
    %c0_35 = arith.constant 0 : index
    %c0_36 = arith.constant 0 : index
    %c0_37 = arith.constant 0 : index
    %22 = vector.load %arg4[%c0_32, %c0_33, %c1_34, %c0_35, %c0_36, %c0_37] : memref<1x1x2x2x90x4xf32, #tpu.memory_space<vmem>>, vector<1x1x1x1x72x4xf32>
    %23 = vector.shape_cast %22 : vector<1x1x1x1x72x4xf32> to vector<72x4xf32>
    %c1_38 = arith.constant 1 : index
    %c0_39 = arith.constant 0 : index
    %c0_40 = arith.constant 0 : index
    %c0_41 = arith.constant 0 : index
    %24 = vector.load %arg5[%c1_38, %c0_39, %c0_40, %c0_41] : memref<3x3x4x4xf32, #tpu.memory_space<vmem>>, vector<1x1x4x4xf32>
    %25 = vector.shape_cast %24 : vector<1x1x4x4xf32> to vector<4x4xf32>
    %cst_42 = arith.constant dense<0.000000e+00> : vector<72x4xf32>
    %26 = tpu.matmul %23, %25, %cst_42 {dimension_numbers = #tpu.dot_dimension_numbers<[1], [0], [0], [1], [0, 0, 1, 1], [], []>} : vector<72x4xf32>, vector<4x4xf32>, vector<72x4xf32> -> vector<72x4xf32>
    %27 = arith.addf %21, %26 : vector<72x4xf32>
    %c0_43 = arith.constant 0 : index
    %c0_44 = arith.constant 0 : index
    %c1_45 = arith.constant 1 : index
    %c1_46 = arith.constant 1 : index
    %c0_47 = arith.constant 0 : index
    %c0_48 = arith.constant 0 : index
    %28 = vector.load %arg4[%c0_43, %c0_44, %c1_45, %c1_46, %c0_47, %c0_48] : memref<1x1x2x2x90x4xf32, #tpu.memory_space<vmem>>, vector<1x1x1x1x72x4xf32>
    %29 = vector.shape_cast %28 : vector<1x1x1x1x72x4xf32> to vector<72x4xf32>
    %c1_49 = arith.constant 1 : index
    %c1_50 = arith.constant 1 : index
    %c0_51 = arith.constant 0 : index
    %c0_52 = arith.constant 0 : index
    %30 = vector.load %arg5[%c1_49, %c1_50, %c0_51, %c0_52] : memref<3x3x4x4xf32, #tpu.memory_space<vmem>>, vector<1x1x4x4xf32>
    %31 = vector.shape_cast %30 : vector<1x1x4x4xf32> to vector<4x4xf32>
    %cst_53 = arith.constant dense<0.000000e+00> : vector<72x4xf32>
    %32 = tpu.matmul %29, %31, %cst_53 {dimension_numbers = #tpu.dot_dimension_numbers<[1], [0], [0], [1], [0, 0, 1, 1], [], []>} : vector<72x4xf32>, vector<4x4xf32>, vector<72x4xf32> -> vector<72x4xf32>
    %33 = arith.addf %27, %32 : vector<72x4xf32>
    %c0_54 = arith.constant 0 : index
    %c0_55 = arith.constant 0 : index
    %c1_56 = arith.constant 1 : index
    %c0_57 = arith.constant 0 : index
    %c1_58 = arith.constant 1 : index
    %c0_59 = arith.constant 0 : index
    %34 = vector.load %arg4[%c0_54, %c0_55, %c1_56, %c0_57, %c1_58, %c0_59] : memref<1x1x2x2x90x4xf32, #tpu.memory_space<vmem>>, vector<1x1x1x1x72x4xf32>
    %35 = vector.shape_cast %34 : vector<1x1x1x1x72x4xf32> to vector<72x4xf32>
    %c1_60 = arith.constant 1 : index
    %c2_61 = arith.constant 2 : index
    %c0_62 = arith.constant 0 : index
    %c0_63 = arith.constant 0 : index
    %36 = vector.load %arg5[%c1_60, %c2_61, %c0_62, %c0_63] : memref<3x3x4x4xf32, #tpu.memory_space<vmem>>, vector<1x1x4x4xf32>
    %37 = vector.shape_cast %36 : vector<1x1x4x4xf32> to vector<4x4xf32>
    %cst_64 = arith.constant dense<0.000000e+00> : vector<72x4xf32>
    %38 = tpu.matmul %35, %37, %cst_64 {dimension_numbers = #tpu.dot_dimension_numbers<[1], [0], [0], [1], [0, 0, 1, 1], [], []>} : vector<72x4xf32>, vector<4x4xf32>, vector<72x4xf32> -> vector<72x4xf32>
    %39 = arith.addf %33, %38 : vector<72x4xf32>
    %c0_65 = arith.constant 0 : index
    %c0_66 = arith.constant 0 : index
    %c0_67 = arith.constant 0 : index
    %c0_68 = arith.constant 0 : index
    %c9 = arith.constant 9 : index
    %c0_69 = arith.constant 0 : index
    %40 = vector.load %arg4[%c0_65, %c0_66, %c0_67, %c0_68, %c9, %c0_69] : memref<1x1x2x2x90x4xf32, #tpu.memory_space<vmem>>, vector<1x1x1x1x72x4xf32>
    %41 = vector.shape_cast %40 : vector<1x1x1x1x72x4xf32> to vector<72x4xf32>
    %c2_70 = arith.constant 2 : index
    %c0_71 = arith.constant 0 : index
    %c0_72 = arith.constant 0 : index
    %c0_73 = arith.constant 0 : index
    %42 = vector.load %arg5[%c2_70, %c0_71, %c0_72, %c0_73] : memref<3x3x4x4xf32, #tpu.memory_space<vmem>>, vector<1x1x4x4xf32>
    %43 = vector.shape_cast %42 : vector<1x1x4x4xf32> to vector<4x4xf32>
    %cst_74 = arith.constant dense<0.000000e+00> : vector<72x4xf32>
    %44 = tpu.matmul %41, %43, %cst_74 {dimension_numbers = #tpu.dot_dimension_numbers<[1], [0], [0], [1], [0, 0, 1, 1], [], []>} : vector<72x4xf32>, vector<4x4xf32>, vector<72x4xf32> -> vector<72x4xf32>
    %45 = arith.addf %39, %44 : vector<72x4xf32>
    %c0_75 = arith.constant 0 : index
    %c0_76 = arith.constant 0 : index
    %c0_77 = arith.constant 0 : index
    %c1_78 = arith.constant 1 : index
    %c9_79 = arith.constant 9 : index
    %c0_80 = arith.constant 0 : index
    %46 = vector.load %arg4[%c0_75, %c0_76, %c0_77, %c1_78, %c9_79, %c0_80] : memref<1x1x2x2x90x4xf32, #tpu.memory_space<vmem>>, vector<1x1x1x1x72x4xf32>
    %47 = vector.shape_cast %46 : vector<1x1x1x1x72x4xf32> to vector<72x4xf32>
    %c2_81 = arith.constant 2 : index
    %c1_82 = arith.constant 1 : index
    %c0_83 = arith.constant 0 : index
    %c0_84 = arith.constant 0 : index
    %48 = vector.load %arg5[%c2_81, %c1_82, %c0_83, %c0_84] : memref<3x3x4x4xf32, #tpu.memory_space<vmem>>, vector<1x1x4x4xf32>
    %49 = vector.shape_cast %48 : vector<1x1x4x4xf32> to vector<4x4xf32>
    %cst_85 = arith.constant dense<0.000000e+00> : vector<72x4xf32>
    %50 = tpu.matmul %47, %49, %cst_85 {dimension_numbers = #tpu.dot_dimension_numbers<[1], [0], [0], [1], [0, 0, 1, 1], [], []>} : vector<72x4xf32>, vector<4x4xf32>, vector<72x4xf32> -> vector<72x4xf32>
    %51 = arith.addf %45, %50 : vector<72x4xf32>
    %c0_86 = arith.constant 0 : index
    %c0_87 = arith.constant 0 : index
    %c0_88 = arith.constant 0 : index
    %c0_89 = arith.constant 0 : index
    %c10 = arith.constant 10 : index
    %c0_90 = arith.constant 0 : index
    %52 = vector.load %arg4[%c0_86, %c0_87, %c0_88, %c0_89, %c10, %c0_90] : memref<1x1x2x2x90x4xf32, #tpu.memory_space<vmem>>, vector<1x1x1x1x72x4xf32>
    %53 = vector.shape_cast %52 : vector<1x1x1x1x72x4xf32> to vector<72x4xf32>
    %c2_91 = arith.constant 2 : index
    %c2_92 = arith.constant 2 : index
    %c0_93 = arith.constant 0 : index
    %c0_94 = arith.constant 0 : index
    %54 = vector.load %arg5[%c2_91, %c2_92, %c0_93, %c0_94] : memref<3x3x4x4xf32, #tpu.memory_space<vmem>>, vector<1x1x4x4xf32>
    %55 = vector.shape_cast %54 : vector<1x1x4x4xf32> to vector<4x4xf32>
    %cst_95 = arith.constant dense<0.000000e+00> : vector<72x4xf32>
    %56 = tpu.matmul %53, %55, %cst_95 {dimension_numbers = #tpu.dot_dimension_numbers<[1], [0], [0], [1], [0, 0, 1, 1], [], []>} : vector<72x4xf32>, vector<4x4xf32>, vector<72x4xf32> -> vector<72x4xf32>
    %57 = arith.addf %51, %56 : vector<72x4xf32>
    %c0_96 = arith.constant 0 : index
    %c0_97 = arith.constant 0 : index
    %58 = vector.load %arg8[%c0_96, %c0_97] : memref<72x4xf32, #tpu.memory_space<vmem>>, vector<72x4xf32>
    tpu.vector_store %arg8[%c0_96, %c0_97], %57 {strides = array<i32>} : memref<72x4xf32, #tpu.memory_space<vmem>>, vector<72x4xf32>,
    %c0_i32_98 = arith.constant 0 : i32
    %59 = arith.cmpi eq, %arg3, %c0_i32_98 : i32
    %60 = arith.extui %59 : i1 to i32
    %c0_i32_99 = arith.constant 0 : i32
    %61 = arith.cmpi ne, %60, %c0_i32_99 : i32
    scf.if %61 {
      %c0_100 = arith.constant 0 : index
      %c0_101 = arith.constant 0 : index
      %62 = vector.load %arg8[%c0_100, %c0_101] : memref<72x4xf32, #tpu.memory_space<vmem>>, vector<72x4xf32>
      %c0_102 = arith.constant 0 : index
      %c0_103 = arith.constant 0 : index
      %c0_104 = arith.constant 0 : index
      %c0_105 = arith.constant 0 : index
      %63 = vector.load %arg7[%c0_102, %c0_103, %c0_104, %c0_105] : memref<1x1x72x4xf32, #tpu.memory_space<vmem>>, vector<1x1x72x4xf32>
      %64 = vector.shape_cast %63 : vector<1x1x72x4xf32> to vector<72x4xf32>
      %65 = vector.shape_cast %62 : vector<72x4xf32> to vector<1x1x72x4xf32>
      tpu.vector_store %arg7[%c0_102, %c0_103, %c0_104, %c0_105], %65 {strides = array<i32>} : memref<1x1x72x4xf32, #tpu.memory_space<vmem>>, vector<1x1x72x4xf32>,
    } else {
    }
    return
  }
  func.func @transform_0(%arg0: i32, %arg1: i32, %arg2: i32, %arg3: i32) -> (i32, i32, i32, i32, i32, i32) {
    %c0_i32 = arith.constant 0 : i32
    %c0_i32_0 = arith.constant 0 : i32
    %c0_i32_1 = arith.constant 0 : i32
    %c0_i32_2 = arith.constant 0 : i32
    return %arg0, %arg1, %c0_i32, %c0_i32_0, %c0_i32_1, %arg3 : i32, i32, i32, i32, i32, i32
  }
  func.func @transform_1(%arg0: i32, %arg1: i32, %arg2: i32, %arg3: i32) -> (i32, i32, i32, i32) {
    %c0_i32 = arith.constant 0 : i32
    %c0_i32_0 = arith.constant 0 : i32
    %c0_i32_1 = arith.constant 0 : i32
    return %c0_i32, %c0_i32_0, %arg3, %arg2 : i32, i32, i32, i32
  }
  func.func @transform_2(%arg0: i32, %arg1: i32, %arg2: i32, %arg3: i32) -> (i32, i32) {
    %c0_i32 = arith.constant 0 : i32
    %c0_i32_0 = arith.constant 0 : i32
    return %c0_i32, %arg2 : i32, i32
  }
  func.func @transform_3(%arg0: i32, %arg1: i32, %arg2: i32, %arg3: i32) -> (i32, i32, i32, i32) {
    %c0_i32 = arith.constant 0 : i32
    %c0_i32_0 = arith.constant 0 : i32
    return %arg0, %arg1, %c0_i32, %arg2 : i32, i32, i32, i32
  }
}

</mosaic_0001>

<bundles_post_ra>
// kernel: downsample_conv.1
= control target key start
LH: loop header
LB: loop body
LE: loop exit
PB: predicated region body
PF: predicated region fallthrough
CT: control target
= control target key end

     0   :  { %s2510_s12 = smov 0   ;;  %s2512_s13 = smov 0   ;;  %s3039_s0 = inlined_call_operand.vmem [shape: f32[2,1,2,2,90,4], index: 0, kind: input, shape index: {}]   ;;  %s3040_s1 = inlined_call_operand.vmem [shape: f32[3,3,4,4], index: 1, kind: input, shape index: {}]   ;;  %s3041_s2 = inlined_call_operand.vmem [shape: f32[1,4], index: 2, kind: input, shape index: {}]   ;;  %s3042_s3 = inlined_call_operand.vmem [shape: f32[2,1,72,4], index: 3, kind: output, shape index: {}]  }
   0x1   :  { %s2514_s14 = smov 0  }
   0x2 LB: > { %s39_s15 = sadd.s32 1, %s2482_s13  ;;  %p1934_p0 = scmp.ge.s32.totalorder %s2486_s14, 1  ;;  %s2486_s14 = sphi %s2514_s14, %s13_s14   ;;  %s2482_s13 = sphi %s2512_s13, %s3044_s13   ;;  %s2478_s12 = sphi %s2510_s12, %s3043_s12  }
   0x3   : > { %p41_p1 = scmp.ge.s32.totalorder %s39_s15, 2  ;;  %p200_p2 = scmp.lt.s32.totalorder %s2486_s14, 3 }
   0x5   : > { %s3046_s15 = smov (%p41_p1, %s39_s15), 0  ;;  %p201_p3 = pnand %p1934_p0, %p200_p2 }
   0x6   : > { %p248_p4 = scmp.lt.s32.totalorder (!%p201_p3), %s2478_s12, 1 }
   0x7   : > { %204 = sbr.rel (%p201_p3) target bundleno = 381 (0x17d), region = 32 }
   0xc   : > { %v321_v0 = vld [vmem:[%s3040_s1] sm:$0xf]  ;;  %vm350_vm0 = vcmask 1043456   ;;  %v2488_v1 = vmov 0.0   ;;  %s3048_s12 = smov (!%p248_p4, %s2478_s12), 1  ;;  %vm2489_vm1 = vmmov 0  }
   0xd   : > { %2173 = vmatprep.subr.mxu0 %v2488_v1  ;;  %2434 = vmatprep.subr.mxu1 %v2488_v1  ;;  %s2436_s18 = smul.u32 384, %s3048_s12  ;;  %vm293_vm2 = vcmask 31744   ;;  %v1968_v2 = vld [vmem:[%s3040_s1 + $0x8] sm:$0xf]  ;;  %v1957_v3 = vld [vmem:[%s3040_s1 + $0x4] sm:$0xf] }
   0xe   : > { %2174 = vmatpush3.msk.msra.mxu0 %vm350_vm0, %v321_v0  ;;  %2435 = vmatpush3.msk.msra.mxu1 %vm350_vm0, %v321_v0  ;;  %v1988_v14 = vld [vmem:[%s3040_s1 + $0xc] sm:$0xf]  ;;  %v2008_v17 = vld [vmem:[%s3040_s1 + $0x10] sm:$0xf]  ;;  %v1937_v24 = vld [vmem:[%s3041_s2] ss:$0 sm:$0xff] }
   0xf   : > { %2175 = vmatprep.mubr.msk.f32.mxu0 %vm2489_vm1, %v2488_v1  ;;  %2190 = vmatprep.mubr.msk.f32.mxu1 %vm2489_vm1, %v2488_v1  ;;  %s2547_s21 = scalar_lea.vmem %s3039_s0, %s2436_s18  ;;  %294 = vst.msk [vmem:[#allocation2] sm:$0xff] %vm293_vm2, %v1937_v24  ;;  %295 = vst.msk [vmem:[#allocation2 + $0x8] sm:$0xff] %vm293_vm2, %v1937_v24  ;;  %v2028_v35 = vld [vmem:[%s3040_s1 + $0x14] sm:$0xf]  ;;  %v2039_v38 = vld [vmem:[%s3040_s1 + $0x18] sm:$0xf] }
  0x10   : > { %2231 = vmatprep.subr.mxu0 %v2488_v1  ;;  %2202 = vmatprep.subr.mxu1 %v2488_v1  ;;  %v312_v4 = vld [vmem:[%s2547_s21] sm:$0xff]  ;;  %v317_v5 = vld [vmem:[%s2547_s21 + $0x28] sm:$0xff]  ;;  %v318_v7 = vld [vmem:[%s2547_s21 + $0x30] sm:$0xff]  ;;  %296 = vst.msk [vmem:[#allocation2 + $0x10] sm:$0xff] %vm293_vm2, %v1937_v24  ;;  %s2437_s17 = smul.u32 72, %s3048_s12 }
  0x11   : > { %2176 = vmatmul.mubr.msk.f32.vlgmr.msra.gmra.mxu0 %vm293_vm2, %v312_v4  ;;  %2191 = vmatmul.mubr.msk.f32.vlgmr.msra.gmra.mxu1 %vm293_vm2, %v317_v5  ;;  %v313_v6 = vld [vmem:[%s2547_s21 + $0x8] sm:$0xff]  ;;  %v314_v8 = vld [vmem:[%s2547_s21 + $0x10] sm:$0xff]  ;;  %v319_v9 = vld [vmem:[%s2547_s21 + $0x38] sm:$0xff]  ;;  %297 = vst.msk [vmem:[#allocation2 + $0x18] sm:$0xff] %vm293_vm2, %v1937_v24 }
  0x12   : > { %2232 = vmatpush3.msk.msra.mxu0 %vm350_vm0, %v1968_v2  ;;  %2203 = vmatpush3.msk.msra.mxu1 %vm350_vm0, %v1957_v3  ;;  %v315_v10 = vld [vmem:[%s2547_s21 + $0x18] sm:$0xff]  ;;  %v320_v11 = vld [vmem:[%s2547_s21 + $0x40] sm:$0xff]  ;;  %v1949_v15 = vld [vmem:[%s2547_s21 + $0x68] sm:$0xff]  ;;  %298 = vst.msk [vmem:[#allocation2 + $0x20] sm:$0xff] %vm293_vm2, %v1937_v24  ;;  %s2991_s20 = scalar_lea.vmem %s3042_s3, %s2437_s17 }
  0x13   : > { %2178 = vmatprep.mubr.msk.f32.mxu0 %vm2489_vm1, %v2488_v1  ;;  %2193 = vmatprep.mubr.msk.f32.mxu1 %vm2489_vm1, %v2488_v1  ;;  %v316_v12 = vld [vmem:[%s2547_s21 + $0x20] sm:$0xff]  ;;  %v1950_v18 = vld [vmem:[%s2547_s21 + $0x70] sm:$0xff]  ;;  %v1951_v20 = vld [vmem:[%s2547_s21 + $0x78] sm:$0xff]  ;;  %299 = vst.msk [vmem:[#allocation2 + $0x28] sm:$0xff] %vm293_vm2, %v1937_v24 }
  0x14   : > { %2260 = vmatprep.subr.mxu1 %v2488_v1  ;;  %2289 = vmatprep.subr.mxu0 %v2488_v1  ;;  %v1948_v13 = vld [vmem:[%s2547_s21 + $0x60] sm:$0xff]  ;;  %v2616_v19 = vld [vmem:[%s2547_s21 + $0x9] sm:$0xff]  ;;  %v2630_v21 = vld [vmem:[%s2547_s21 + $0x11] sm:$0xff]  ;;  %300 = vst.msk [vmem:[#allocation2 + $0x30] sm:$0xff] %vm293_vm2, %v1937_v24 }
  0x15   : > { %2179 = vmatmul.mubr.msk.f32.gmra.mxu0 %vm293_vm2, %v313_v6  ;;  %2194 = vmatmul.mubr.msk.f32.gmra.mxu1 %vm293_vm2, %v318_v7  ;;  %v634_v16 = vld [vmem:[%s2547_s21 + $0x1] sm:$0xff]  ;;  %v2641_v23 = vld [vmem:[%s2547_s21 + $0x19] sm:$0xff]  ;;  %301 = vst.msk [vmem:[#allocation2 + $0x38] sm:$0xff] %vm293_vm2, %v1937_v24  ;;  %302 = vst.msk [vmem:[#allocation2 + $0x40] sm:$0xff] %vm293_vm2, %v1937_v24 }
  0x16   : > { %2181 = vmatprep.mubr.msk.f32.mxu0 %vm2489_vm1, %v2488_v1  ;;  %2196 = vmatprep.mubr.msk.f32.mxu1 %vm2489_vm1, %v2488_v1  ;;  %v1952_v22 = vld [vmem:[%s2547_s21 + $0x80] sm:$0xff]  ;;  %v1953_v25 = vld [vmem:[%s2547_s21 + $0x88] sm:$0xff]  ;;  %v1954_v27 = vld [vmem:[%s2547_s21 + $0x90] sm:$0xff] }
  0x17   : > { %v2655_v26 = vld [vmem:[%s2547_s21 + $0x21] sm:$0xff]  ;;  %v2675_v28 = vld [vmem:[%s2547_s21 + $0x29] sm:$0xff]  ;;  %v1955_v29 = vld [vmem:[%s2547_s21 + $0x98] sm:$0xff] }
  0x18   : > { %v2686_v30 = vld [vmem:[%s2547_s21 + $0x31] sm:$0xff]  ;;  %v1956_v31 = vld [vmem:[%s2547_s21 + $0xa0] sm:$0xff]  ;;  %v1980_v36 = vld [vmem:[%s2547_s21 + $0xc8] sm:$0xff] }
  0x19   : > { %2182 = vmatmul.mubr.msk.f32.gmra.mxu0 %vm293_vm2, %v314_v8  ;;  %2197 = vmatmul.mubr.msk.f32.gmra.mxu1 %vm293_vm2, %v319_v9  ;;  %v2697_v32 = vld [vmem:[%s2547_s21 + $0x39] sm:$0xff]  ;;  %v2707_v33 = vld [vmem:[%s2547_s21 + $0x41] sm:$0xff]  ;;  %v1981_v39 = vld [vmem:[%s2547_s21 + $0xd0] sm:$0xff] }
  0x1a   : > { %2184 = vmatprep.mubr.msk.f32.mxu0 %vm2489_vm1, %v2488_v1  ;;  %2199 = vmatprep.mubr.msk.f32.mxu1 %vm2489_vm1, %v2488_v1  ;;  %v1979_v34 = vld [vmem:[%s2547_s21 + $0xc0] sm:$0xff]  ;;  %v2000_v40 = vld [vmem:[%s2547_s21 + $0x128] sm:$0xff]  ;;  %v1982_v41 = vld [vmem:[%s2547_s21 + $0xd8] sm:$0xff] }
  0x1b   : > { %v1999_v37 = vld [vmem:[%s2547_s21 + $0x120] sm:$0xff]  ;;  %v2001_v42 = vld [vmem:[%s2547_s21 + $0x130] sm:$0xff]  ;;  %v2002_v44 = vld [vmem:[%s2547_s21 + $0x138] sm:$0xff] }
  0x1c   : > { %v1983_v43 = vld [vmem:[%s2547_s21 + $0xe0] sm:$0xff]  ;;  %v1984_v45 = vld [vmem:[%s2547_s21 + $0xe8] sm:$0xff]  ;;  %v1985_v47 = vld [vmem:[%s2547_s21 + $0xf0] sm:$0xff] }
  0x1d   : > { %2185 = vmatmul.mubr.msk.f32.gmra.mxu0 %vm293_vm2, %v315_v10  ;;  %2200 = vmatmul.mubr.msk.f32.gmra.mxu1 %vm293_vm2, %v320_v11  ;;  %v2003_v46 = vld [vmem:[%s2547_s21 + $0x140] sm:$0xff]  ;;  %v2004_v48 = vld [vmem:[%s2547_s21 + $0x148] sm:$0xff]  ;;  %v1986_v49 = vld [vmem:[%s2547_s21 + $0xf8] sm:$0xff] }
  0x1e   : > { %2187 = vmatprep.mubr.msk.f32.mxu0 %vm2489_vm1, %v2488_v1  ;;  %2204 = vmatprep.mubr.msk.f32.mxu1 %vm2489_vm1, %v2488_v1  ;;  %v2005_v50 = vld [vmem:[%s2547_s21 + $0x150] sm:$0xff]  ;;  %v1987_v51 = vld [vmem:[%s2547_s21 + $0x100] sm:$0xff]  ;;  %v2006_v52 = vld [vmem:[%s2547_s21 + $0x158] sm:$0xff] }
  0x1f   : > { %v2007_v53 = vld [vmem:[%s2547_s21 + $0x160] sm:$0xff]  ;;  %v2059_v55 = vld [vmem:[%s3040_s1 + $0x1c] sm:$0xf]  ;;  %v2020_v56 = vld [vmem:[%s2547_s21 + $0xc9] sm:$0xff] }
  0x20   : > { %v2019_v54 = vld [vmem:[%s2547_s21 + $0xc1] sm:$0xff]  ;;  %v2021_v58 = vld [vmem:[%s2547_s21 + $0xd1] sm:$0xff]  ;;  %v2022_v59 = vld [vmem:[%s2547_s21 + $0xd9] sm:$0xff] }
  0x21   : > { %2188 = vmatmul.mubr.msk.f32.gmra.mxu0 %vm293_vm2, %v316_v12  ;;  %2205 = vmatmul.mubr.msk.f32.vlgmr.msra.gmra.mxu1 %vm293_vm2, %v1948_v13  ;;  %v2070_v57 = vld [vmem:[%s3040_s1 + $0x20] sm:$0xf]  ;;  %v2024_v61 = vld [vmem:[%s2547_s21 + $0xe9] sm:$0xff]  ;;  %v2025_v62 = vld [vmem:[%s2547_s21 + $0xf1] sm:$0xff] }
  0x22   : > { %2261 = vmatpush3.msk.msra.mxu1 %vm350_vm0, %v1988_v14  ;;  %2207 = vmatprep.mubr.msk.f32.mxu1 %vm2489_vm1, %v2488_v1  ;;  %v2023_v60 = vld [vmem:[%s2547_s21 + $0xe1] sm:$0xff]  ;;  %v2026_v63 = vld [vmem:[%s2547_s21 + $0xf9] sm:$0xff]  ;;  %v1284_v2 = vld [vmem:[%s2547_s21 + $0x49] sm:$0xff] }
  0x23   : > { %2233 = vmatprep.mubr.msk.f32.mxu0 %vm2489_vm1, %v2488_v1  ;;  %2318 = vmatprep.subr.mxu1 %v2488_v1  ;;  %v2027_v0 = vld [vmem:[%s2547_s21 + $0x101] sm:$0xff]  ;;  %v2050_v3 = vld [vmem:[%s2547_s21 + $0x69] sm:$0xff]  ;;  %v2051_v4 = vld [vmem:[%s2547_s21 + $0x71] sm:$0xff] }
  0x24   : > { %v1596_v5 = vld [vmem:[%s2547_s21 + $0xa] sm:$0xff]  ;;  %v2052_v6 = vld [vmem:[%s2547_s21 + $0x79] sm:$0xff]  ;;  %v2053_v8 = vld [vmem:[%s2547_s21 + $0x81] sm:$0xff] }
  0x25   : > { %2208 = vmatmul.mubr.msk.f32.gmra.mxu1 %vm293_vm2, %v1949_v15  ;;  %2234 = vmatmul.mubr.msk.f32.vlgmr.msra.gmra.mxu0 %vm293_vm2, %v634_v16  ;;  %v1597_v7 = vld [vmem:[%s2547_s21 + $0x12] sm:$0xff]  ;;  %v1598_v9 = vld [vmem:[%s2547_s21 + $0x1a] sm:$0xff]  ;;  %v2054_v10 = vld [vmem:[%s2547_s21 + $0x89] sm:$0xff] }
  0x26   : > { %2290 = vmatpush3.msk.msra.mxu0 %vm350_vm0, %v2008_v17  ;;  %2210 = vmatprep.mubr.msk.f32.mxu1 %vm2489_vm1, %v2488_v1  ;;  %v1599_v11 = vld [vmem:[%s2547_s21 + $0x22] sm:$0xff]  ;;  %v2055_v12 = vld [vmem:[%s2547_s21 + $0x91] sm:$0xff]  ;;  %v2056_v14 = vld [vmem:[%s2547_s21 + $0x99] sm:$0xff] }
  0x27   : > { %2236 = vmatprep.mubr.msk.f32.mxu0 %vm2489_vm1, %v2488_v1  ;;  %2347 = vmatprep.subr.mxu0 %v2488_v1  ;;  %v1600_v13 = vld [vmem:[%s2547_s21 + $0x2a] sm:$0xff]  ;;  %v1601_v15 = vld [vmem:[%s2547_s21 + $0x32] sm:$0xff]  ;;  %v2057_v16 = vld [vmem:[%s2547_s21 + $0xa1] sm:$0xff] }
  0x28   : > { %v1602_v17 = vld [vmem:[%s2547_s21 + $0x3a] sm:$0xff] }
  0x29   : > { %2211 = vmatmul.mubr.msk.f32.gmra.mxu1 %vm293_vm2, %v1950_v18  ;;  %2237 = vmatmul.mubr.msk.f32.gmra.mxu0 %vm293_vm2, %v2616_v19  ;;  %v2058_v18 = vld [vmem:[%s2547_s21 + $0xa9] sm:$0xff] }
  0x2a   : > { %2213 = vmatprep.mubr.msk.f32.mxu1 %vm2489_vm1, %v2488_v1  ;;  %2239 = vmatprep.mubr.msk.f32.mxu0 %vm2489_vm1, %v2488_v1 }
  0x2d   : > { %2214 = vmatmul.mubr.msk.f32.gmra.mxu1 %vm293_vm2, %v1951_v20  ;;  %2240 = vmatmul.mubr.msk.f32.gmra.mxu0 %vm293_vm2, %v2630_v21  ;;  %v1604_v20 = vld [vmem:[%s2547_s21 + $0x4a] sm:$0xff] }
  0x2e   : > { %2216 = vmatprep.mubr.msk.f32.mxu1 %vm2489_vm1, %v2488_v1  ;;  %2242 = vmatprep.mubr.msk.f32.mxu0 %vm2489_vm1, %v2488_v1 }
  0x31   : > { %2217 = vmatmul.mubr.msk.f32.gmra.mxu1 %vm293_vm2, %v1952_v22  ;;  %2243 = vmatmul.mubr.msk.f32.gmra.mxu0 %vm293_vm2, %v2641_v23 }
  0x32   : > { %2219 = vmatprep.mubr.msk.f32.mxu1 %vm2489_vm1, %v2488_v1  ;;  %2245 = vmatprep.mubr.msk.f32.mxu0 %vm2489_vm1, %v2488_v1 }
  0x35   : > { %2220 = vmatmul.mubr.msk.f32.gmra.mxu1 %vm293_vm2, %v1953_v25  ;;  %2246 = vmatmul.mubr.msk.f32.gmra.mxu0 %vm293_vm2, %v2655_v26 }
  0x36   : > { %2222 = vmatprep.mubr.msk.f32.mxu1 %vm2489_vm1, %v2488_v1  ;;  %2248 = vmatprep.mubr.msk.f32.mxu0 %vm2489_vm1, %v2488_v1 }
  0x39   : > { %2223 = vmatmul.mubr.msk.f32.gmra.mxu1 %vm293_vm2, %v1954_v27  ;;  %2249 = vmatmul.mubr.msk.f32.gmra.mxu0 %vm293_vm2, %v2675_v28 }
  0x3a   : > { %2225 = vmatprep.mubr.msk.f32.mxu1 %vm2489_vm1, %v2488_v1  ;;  %2251 = vmatprep.mubr.msk.f32.mxu0 %vm2489_vm1, %v2488_v1 }
  0x3d   : > { %2226 = vmatmul.mubr.msk.f32.gmra.mxu1 %vm293_vm2, %v1955_v29  ;;  %2252 = vmatmul.mubr.msk.f32.gmra.mxu0 %vm293_vm2, %v2686_v30 }
  0x3e   : > { %2228 = vmatprep.mubr.msk.f32.mxu1 %vm2489_vm1, %v2488_v1  ;;  %2254 = vmatprep.mubr.msk.f32.mxu0 %vm2489_vm1, %v2488_v1 }
  0x41   : > { %2229 = vmatmul.mubr.msk.f32.gmra.mxu1 %vm293_vm2, %v1956_v31  ;;  %2255 = vmatmul.mubr.msk.f32.gmra.mxu0 %vm293_vm2, %v2697_v32 }
  0x42   : > { %2257 = vmatprep.mubr.msk.f32.mxu0 %vm2489_vm1, %v2488_v1  ;;  %2262 = vmatprep.mubr.msk.f32.mxu1 %vm2489_vm1, %v2488_v1 }
  0x45   : > { %2258 = vmatmul.mubr.msk.f32.gmra.mxu0 %vm293_vm2, %v2707_v33  ;;  %2263 = vmatmul.mubr.msk.f32.vlgmr.msra.gmra.mxu1 %vm293_vm2, %v1979_v34 }
  0x46   : > { %2319 = vmatpush3.msk.msra.mxu1 %vm350_vm0, %v2028_v35  ;;  %2265 = vmatprep.mubr.msk.f32.mxu1 %vm2489_vm1, %v2488_v1 }
  0x47   : > { %2291 = vmatprep.mubr.msk.f32.mxu0 %vm2489_vm1, %v2488_v1  ;;  %2376 = vmatprep.subr.mxu1 %v2488_v1 }
  0x49   : > { %2266 = vmatmul.mubr.msk.f32.gmra.mxu1 %vm293_vm2, %v1980_v36  ;;  %2292 = vmatmul.mubr.msk.f32.vlgmr.msra.gmra.mxu0 %vm293_vm2, %v1999_v37 }
  0x4a   : > { %2348 = vmatpush3.msk.msra.mxu0 %vm350_vm0, %v2039_v38  ;;  %2268 = vmatprep.mubr.msk.f32.mxu1 %vm2489_vm1, %v2488_v1  ;;  %v304_v38 = vld [vmem:[#allocation2 + $0x8] sm:$0xff] }
  0x4b   : > { %2294 = vmatprep.mubr.msk.f32.mxu0 %vm2489_vm1, %v2488_v1  ;;  %2405 = vmatprep.subr.mxu0 %v2488_v1 }
  0x4d   : > { %2269 = vmatmul.mubr.msk.f32.gmra.mxu1 %vm293_vm2, %v1981_v39  ;;  %2295 = vmatmul.mubr.msk.f32.gmra.mxu0 %vm293_vm2, %v2000_v40 }
  0x4e   : > { %2271 = vmatprep.mubr.msk.f32.mxu1 %vm2489_vm1, %v2488_v1  ;;  %2297 = vmatprep.mubr.msk.f32.mxu0 %vm2489_vm1, %v2488_v1 }
  0x51   : > { %2272 = vmatmul.mubr.msk.f32.gmra.mxu1 %vm293_vm2, %v1982_v41  ;;  %2298 = vmatmul.mubr.msk.f32.gmra.mxu0 %vm293_vm2, %v2001_v42 }
  0x52   : > { %2274 = vmatprep.mubr.msk.f32.mxu1 %vm2489_vm1, %v2488_v1  ;;  %2300 = vmatprep.mubr.msk.f32.mxu0 %vm2489_vm1, %v2488_v1 }
  0x55   : > { %2275 = vmatmul.mubr.msk.f32.gmra.mxu1 %vm293_vm2, %v1983_v43  ;;  %2301 = vmatmul.mubr.msk.f32.gmra.mxu0 %vm293_vm2, %v2002_v44 }
  0x56   : > { %2277 = vmatprep.mubr.msk.f32.mxu1 %vm2489_vm1, %v2488_v1  ;;  %2303 = vmatprep.mubr.msk.f32.mxu0 %vm2489_vm1, %v2488_v1 }
  0x59   : > { %2278 = vmatmul.mubr.msk.f32.gmra.mxu1 %vm293_vm2, %v1984_v45  ;;  %2304 = vmatmul.mubr.msk.f32.gmra.mxu0 %vm293_vm2, %v2003_v46  ;;  %v305_v45 = vld [vmem:[#allocation2 + $0x10] sm:$0xff] }
  0x5a   : > { %2280 = vmatprep.mubr.msk.f32.mxu1 %vm2489_vm1, %v2488_v1  ;;  %2306 = vmatprep.mubr.msk.f32.mxu0 %vm2489_vm1, %v2488_v1 }
  0x5d   : > { %2281 = vmatmul.mubr.msk.f32.gmra.mxu1 %vm293_vm2, %v1985_v47  ;;  %2307 = vmatmul.mubr.msk.f32.gmra.mxu0 %vm293_vm2, %v2004_v48 }
  0x5e   : > { %2283 = vmatprep.mubr.msk.f32.mxu1 %vm2489_vm1, %v2488_v1  ;;  %2309 = vmatprep.mubr.msk.f32.mxu0 %vm2489_vm1, %v2488_v1 }
  0x61   : > { %2284 = vmatmul.mubr.msk.f32.gmra.mxu1 %vm293_vm2, %v1986_v49  ;;  %2310 = vmatmul.mubr.msk.f32.gmra.mxu0 %vm293_vm2, %v2005_v50 }
  0x62   : > { %2286 = vmatprep.mubr.msk.f32.mxu1 %vm2489_vm1, %v2488_v1  ;;  %2312 = vmatprep.mubr.msk.f32.mxu0 %vm2489_vm1, %v2488_v1 }
  0x65   : > { %2287 = vmatmul.mubr.msk.f32.gmra.mxu1 %vm293_vm2, %v1987_v51  ;;  %2313 = vmatmul.mubr.msk.f32.gmra.mxu0 %vm293_vm2, %v2006_v52 }
  0x66   : > { %2315 = vmatprep.mubr.msk.f32.mxu0 %vm2489_vm1, %v2488_v1  ;;  %2320 = vmatprep.mubr.msk.f32.mxu1 %vm2489_vm1, %v2488_v1 }
  0x69   : > { %2316 = vmatmul.mubr.msk.f32.gmra.mxu0 %vm293_vm2, %v2007_v53  ;;  %2321 = vmatmul.mubr.msk.f32.vlgmr.msra.gmra.mxu1 %vm293_vm2, %v2019_v54  ;;  %v306_v53 = vld [vmem:[#allocation2 + $0x18] sm:$0xff] }
  0x6a   : > { %2377 = vmatpush3.msk.msra.mxu1 %vm350_vm0, %v2059_v55  ;;  %2323 = vmatprep.mubr.msk.f32.mxu1 %vm2489_vm1, %v2488_v1 }
  0x6b   : > { %2349 = vmatprep.mubr.msk.f32.mxu0 %vm2489_vm1, %v2488_v1 }
  0x6d   : > { %2324 = vmatmul.mubr.msk.f32.gmra.mxu1 %vm293_vm2, %v2020_v56  ;;  %2350 = vmatmul.mubr.msk.f32.vlgmr.msra.gmra.mxu0 %vm293_vm2, %v2616_v19  ;;  %v1603_v19 = vld [vmem:[%s2547_s21 + $0x42] sm:$0xff] }
  0x6e   : > { %2406 = vmatpush3.msk.msra.mxu0 %vm350_vm0, %v2070_v57  ;;  %2326 = vmatprep.mubr.msk.f32.mxu1 %vm2489_vm1, %v2488_v1 }
  0x6f   : > { %2352 = vmatprep.mubr.msk.f32.mxu0 %vm2489_vm1, %v2488_v1 }
  0x71   : > { %2327 = vmatmul.mubr.msk.f32.gmra.mxu1 %vm293_vm2, %v2021_v58  ;;  %2353 = vmatmul.mubr.msk.f32.gmra.mxu0 %vm293_vm2, %v2630_v21 }
  0x72   : > { %2329 = vmatprep.mubr.msk.f32.mxu1 %vm2489_vm1, %v2488_v1  ;;  %2355 = vmatprep.mubr.msk.f32.mxu0 %vm2489_vm1, %v2488_v1 }
  0x75   : > { %2330 = vmatmul.mubr.msk.f32.gmra.mxu1 %vm293_vm2, %v2022_v59  ;;  %2356 = vmatmul.mubr.msk.f32.gmra.mxu0 %vm293_vm2, %v2641_v23 }
  0x76   : > { %2332 = vmatprep.mubr.msk.f32.mxu1 %vm2489_vm1, %v2488_v1  ;;  %2358 = vmatprep.mubr.msk.f32.mxu0 %vm2489_vm1, %v2488_v1 }
  0x79   : > { %2333 = vmatmul.mubr.msk.f32.gmra.mxu1 %vm293_vm2, %v2023_v60  ;;  %2359 = vmatmul.mubr.msk.f32.gmra.mxu0 %vm293_vm2, %v2655_v26 }
  0x7a   : > { %2335 = vmatprep.mubr.msk.f32.mxu1 %vm2489_vm1, %v2488_v1  ;;  %2361 = vmatprep.mubr.msk.f32.mxu0 %vm2489_vm1, %v2488_v1 }
  0x7d   : > { %2336 = vmatmul.mubr.msk.f32.gmra.mxu1 %vm293_vm2, %v2024_v61  ;;  %2362 = vmatmul.mubr.msk.f32.gmra.mxu0 %vm293_vm2, %v2675_v28  ;;  %v307_v61 = vld [vmem:[#allocation2 + $0x20] sm:$0xff] }
  0x7e   : > { %2338 = vmatprep.mubr.msk.f32.mxu1 %vm2489_vm1, %v2488_v1  ;;  %2364 = vmatprep.mubr.msk.f32.mxu0 %vm2489_vm1, %v2488_v1 }
  0x81   : > { %2339 = vmatmul.mubr.msk.f32.gmra.mxu1 %vm293_vm2, %v2025_v62  ;;  %2365 = vmatmul.mubr.msk.f32.gmra.mxu0 %vm293_vm2, %v2686_v30 }
  0x82   : > { %2341 = vmatprep.mubr.msk.f32.mxu1 %vm2489_vm1, %v2488_v1  ;;  %2367 = vmatprep.mubr.msk.f32.mxu0 %vm2489_vm1, %v2488_v1 }
  0x85   : > { %2342 = vmatmul.mubr.msk.f32.gmra.mxu1 %vm293_vm2, %v2026_v63  ;;  %2368 = vmatmul.mubr.msk.f32.gmra.mxu0 %vm293_vm2, %v2697_v32 }
  0x86   : > { %2344 = vmatprep.mubr.msk.f32.mxu1 %vm2489_vm1, %v2488_v1  ;;  %2370 = vmatprep.mubr.msk.f32.mxu0 %vm2489_vm1, %v2488_v1 }
  0x89   : > { %2345 = vmatmul.mubr.msk.f32.gmra.mxu1 %vm293_vm2, %v2027_v0  ;;  %2371 = vmatmul.mubr.msk.f32.gmra.mxu0 %vm293_vm2, %v2707_v33  ;;  %v303_v33 = vld [vmem:[#allocation2] sm:$0xff] }
  0x8a   : > { %2373 = vmatprep.mubr.msk.f32.mxu0 %vm2489_vm1, %v2488_v1  ;;  %2378 = vmatprep.mubr.msk.f32.mxu1 %vm2489_vm1, %v2488_v1 }
  0x8d   : > { %2374 = vmatmul.mubr.msk.f32.gmra.mxu0 %vm293_vm2, %v1284_v2  ;;  %2379 = vmatmul.mubr.msk.f32.vlgmr.msra.gmra.mxu1 %vm293_vm2, %v2050_v3 }
  0x8e   : > { %2381 = vmatprep.mubr.msk.f32.mxu1 %vm2489_vm1, %v2488_v1  ;;  %2407 = vmatprep.mubr.msk.f32.mxu0 %vm2489_vm1, %v2488_v1 }
  0x91   : > { %2382 = vmatmul.mubr.msk.f32.gmra.mxu1 %vm293_vm2, %v2051_v4  ;;  %2408 = vmatmul.mubr.msk.f32.vlgmr.msra.gmra.mxu0 %vm293_vm2, %v1596_v5 }
  0x92   : > { %2384 = vmatprep.mubr.msk.f32.mxu1 %vm2489_vm1, %v2488_v1  ;;  %2410 = vmatprep.mubr.msk.f32.mxu0 %vm2489_vm1, %v2488_v1 }
  0x95   : > { %2385 = vmatmul.mubr.msk.f32.gmra.mxu1 %vm293_vm2, %v2052_v6  ;;  %2411 = vmatmul.mubr.msk.f32.gmra.mxu0 %vm293_vm2, %v1597_v7  ;;  %v308_v6 = vld [vmem:[#allocation2 + $0x28] sm:$0xff] }
  0x96   : > { %2387 = vmatprep.mubr.msk.f32.mxu1 %vm2489_vm1, %v2488_v1  ;;  %2413 = vmatprep.mubr.msk.f32.mxu0 %vm2489_vm1, %v2488_v1 }
  0x99   : > { %2388 = vmatmul.mubr.msk.f32.gmra.mxu1 %vm293_vm2, %v2053_v8  ;;  %2414 = vmatmul.mubr.msk.f32.gmra.mxu0 %vm293_vm2, %v1598_v9 }
  0x9a   : > { %2390 = vmatprep.mubr.msk.f32.mxu1 %vm2489_vm1, %v2488_v1  ;;  %2416 = vmatprep.mubr.msk.f32.mxu0 %vm2489_vm1, %v2488_v1 }
  0x9d   : > { %2391 = vmatmul.mubr.msk.f32.gmra.mxu1 %vm293_vm2, %v2054_v10  ;;  %2417 = vmatmul.mubr.msk.f32.gmra.mxu0 %vm293_vm2, %v1599_v11 }
  0x9e   : > { %2393 = vmatprep.mubr.msk.f32.mxu1 %vm2489_vm1, %v2488_v1  ;;  %2419 = vmatprep.mubr.msk.f32.mxu0 %vm2489_vm1, %v2488_v1 }
  0xa1   : > { %2394 = vmatmul.mubr.msk.f32.gmra.mxu1 %vm293_vm2, %v2055_v12  ;;  %2420 = vmatmul.mubr.msk.f32.gmra.mxu0 %vm293_vm2, %v1600_v13 }
  0xa2   : > { %2396 = vmatprep.mubr.msk.f32.mxu1 %vm2489_vm1, %v2488_v1  ;;  %2422 = vmatprep.mubr.msk.f32.mxu0 %vm2489_vm1, %v2488_v1 }
  0xa5   : > { %2397 = vmatmul.mubr.msk.f32.gmra.mxu1 %vm293_vm2, %v2056_v14  ;;  %2423 = vmatmul.mubr.msk.f32.gmra.mxu0 %vm293_vm2, %v1601_v15  ;;  %v309_v14 = vld [vmem:[#allocation2 + $0x30] sm:$0xff] }
  0xa6   : > { %2399 = vmatprep.mubr.msk.f32.mxu1 %vm2489_vm1, %v2488_v1  ;;  %2425 = vmatprep.mubr.msk.f32.mxu0 %vm2489_vm1, %v2488_v1 }
  0xa9   : > { %2400 = vmatmul.mubr.msk.f32.gmra.mxu1 %vm293_vm2, %v2057_v16  ;;  %2426 = vmatmul.mubr.msk.f32.gmra.mxu0 %vm293_vm2, %v1602_v17 }
  0xaa   : > { %2402 = vmatprep.mubr.msk.f32.mxu1 %vm2489_vm1, %v2488_v1  ;;  %2428 = vmatprep.mubr.msk.f32.mxu0 %vm2489_vm1, %v2488_v1 }
  0xad   : > { %2403 = vmatmul.mubr.msk.f32.gmra.mxu1 %vm293_vm2, %v2058_v18  ;;  %2429 = vmatmul.mubr.msk.f32.gmra.mxu0 %vm293_vm2, %v1603_v19 }
  0xae   : > { %2431 = vmatprep.mubr.msk.f32.mxu0 %vm2489_vm1, %v2488_v1 }
  0xb1   : > { %2432 = vmatmul.mubr.msk.f32.gmra.mxu0 %vm293_vm2, %v1604_v20 }
  0xd1   : > { %v420_v21 = vpop.f32.mrf.mxu0  ;;  %v445_v22 = vpop.f32.mrf.mxu1 }
  0xd2   : > { %v464_v37 = vadd.f32 %v420_v21, %v303_v33  ;;  %v469_v13 = vadd.f32 %v445_v22, %v308_v6  ;;  %v311_v33 = vld [vmem:[#allocation2 + $0x40] sm:$0xff] }
  0xd3   : > { %v2177_v23 = vpop.f32.mrf.mxu0  ;;  %v2192_v24 = vpop.f32.mrf.mxu1 }
  0xd4   : > { %v310_v23 = vld [vmem:[#allocation2 + $0x38] sm:$0xff] }
  0xd5   : > { %v425_v25 = vpop.f32.mrf.mxu0  ;;  %v450_v26 = vpop.f32.mrf.mxu1 }
  0xd6   : > { %v465_v44 = vadd.f32 %v425_v25, %v304_v38  ;;  %v470_v21 = vadd.f32 %v450_v26, %v309_v14 }
  0xd7   : > { %v2180_v27 = vpop.f32.mrf.mxu0  ;;  %v2195_v28 = vpop.f32.mrf.mxu1 }
  0xd9   : > { %v430_v29 = vpop.f32.mrf.mxu0  ;;  %v2943_v30 = vpop.f32.mrf.mxu1 }
  0xda   : > { %v466_v52 = vadd.f32 %v430_v29, %v305_v45 }
  0xdb   : > { %v2183_v31 = vpop.f32.mrf.mxu0  ;;  %v2198_v32 = vpop.f32.mrf.mxu1 }
  0xdc   : > { %v471_v32 = vadd.f32 %v2943_v30, %v310_v23 }
  0xdd   : > { %v435_v34 = vpop.f32.mrf.mxu0  ;;  %v2945_v35 = vpop.f32.mrf.mxu1 }
  0xde   : > { %v467_v60 = vadd.f32 %v435_v34, %v306_v53 }
  0xdf   : > { %v2186_v1 = vpop.f32.mrf.mxu0  ;;  %v2201_v36 = vpop.f32.mrf.mxu1 }
  0xe1   : > { %v440_v39 = vpop.f32.mrf.mxu0  ;;  %v581_v40 = vpop.f32.mrf.mxu1 }
  0xe2   : > { %v625_v41 = vadd.f32 %v581_v40, %v464_v37  ;;  %v468_v5 = vadd.f32 %v440_v39, %v307_v61  ;;  %v472_v39 = vadd.f32 %v2945_v35, %v311_v33 }
  0xe3   : > { %v2189_v42 = vpop.f32.mrf.mxu0  ;;  %v2206_v43 = vpop.f32.mrf.mxu1 }
  0xe5   : > { %v586_v46 = vpop.f32.mrf.mxu1  ;;  %v741_v47 = vpop.f32.mrf.mxu0 }
  0xe6   : > { %v626_v48 = vadd.f32 %v586_v46, %v465_v44  ;;  %v785_v49 = vadd.f32 %v741_v47, %v625_v41 }
  0xe7   : > { %v2209_v50 = vpop.f32.mrf.mxu1  ;;  %v2235_v51 = vpop.f32.mrf.mxu0 }
  0xe9   : > { %v591_v54 = vpop.f32.mrf.mxu1  ;;  %v746_v55 = vpop.f32.mrf.mxu0 }
  0xea   : > { %v627_v56 = vadd.f32 %v591_v54, %v466_v52  ;;  %v786_v57 = vadd.f32 %v746_v55, %v626_v48 }
  0xeb   : > { %v2212_v58 = vpop.f32.mrf.mxu1  ;;  %v2238_v59 = vpop.f32.mrf.mxu0 }
  0xed   : > { %v596_v62 = vpop.f32.mrf.mxu1  ;;  %v751_v63 = vpop.f32.mrf.mxu0 }
  0xee   : > { %v628_v0 = vadd.f32 %v596_v62, %v467_v60  ;;  %v787_v2 = vadd.f32 %v751_v63, %v627_v56 }
  0xef   : > { %v2215_v3 = vpop.f32.mrf.mxu1  ;;  %v2241_v4 = vpop.f32.mrf.mxu0 }
  0xf1   : > { %v601_v7 = vpop.f32.mrf.mxu1  ;;  %v756_v8 = vpop.f32.mrf.mxu0 }
  0xf2   : > { %v629_v9 = vadd.f32 %v601_v7, %v468_v5  ;;  %v788_v10 = vadd.f32 %v756_v8, %v628_v0 }
  0xf3   : > { %v2218_v11 = vpop.f32.mrf.mxu1  ;;  %v2244_v12 = vpop.f32.mrf.mxu0 }
  0xf5   : > { %v606_v15 = vpop.f32.mrf.mxu1  ;;  %v761_v16 = vpop.f32.mrf.mxu0 }
  0xf6   : > { %v630_v17 = vadd.f32 %v606_v15, %v469_v13  ;;  %v789_v18 = vadd.f32 %v761_v16, %v629_v9 }
  0xf7   : > { %v2221_v19 = vpop.f32.mrf.mxu1  ;;  %v2247_v20 = vpop.f32.mrf.mxu0 }
  0xf9   : > { %v611_v24 = vpop.f32.mrf.mxu1  ;;  %v766_v25 = vpop.f32.mrf.mxu0 }
  0xfa   : > { %v631_v27 = vadd.f32 %v611_v24, %v470_v21  ;;  %v790_v28 = vadd.f32 %v766_v25, %v630_v17 }
  0xfb   : > { %v2224_v29 = vpop.f32.mrf.mxu1  ;;  %v2250_v31 = vpop.f32.mrf.mxu0 }
  0xfd   : > { %v616_v34 = vpop.f32.mrf.mxu1  ;;  %v771_v22 = vpop.f32.mrf.mxu0 }
  0xfe   : > { %v632_v1 = vadd.f32 %v616_v34, %v471_v32  ;;  %v791_v36 = vadd.f32 %v771_v22, %v631_v27 }
  0xff   : > { %v2227_v37 = vpop.f32.mrf.mxu1  ;;  %v2253_v38 = vpop.f32.mrf.mxu0 }
 0x101   : > { %v621_v40 = vpop.f32.mrf.mxu1  ;;  %v776_v26 = vpop.f32.mrf.mxu0 }
 0x102   : > { %v633_v41 = vadd.f32 %v621_v40, %v472_v39  ;;  %v792_v42 = vadd.f32 %v776_v26, %v632_v1 }
 0x103   : > { %v2230_v43 = vpop.f32.mrf.mxu1  ;;  %v2256_v44 = vpop.f32.mrf.mxu0 }
 0x105   : > { %v781_v45 = vpop.f32.mrf.mxu0  ;;  %v902_v46 = vpop.f32.mrf.mxu1 }
 0x106   : > { %v793_v47 = vadd.f32 %v781_v45, %v633_v41  ;;  %v946_v48 = vadd.f32 %v902_v46, %v785_v49 }
 0x107   : > { %v2259_v30 = vpop.f32.mrf.mxu0  ;;  %v2264_v50 = vpop.f32.mrf.mxu1 }
 0x109   : > { %v907_v51 = vpop.f32.mrf.mxu1  ;;  %v1063_v52 = vpop.f32.mrf.mxu0 }
 0x10a   : > { %v947_v53 = vadd.f32 %v907_v51, %v786_v57  ;;  %v2949_v54 = vadd.f32 %v1063_v52, %v946_v48 }
 0x10b   : > { %v2267_v55 = vpop.f32.mrf.mxu1  ;;  %v2293_v56 = vpop.f32.mrf.mxu0 }
 0x10d   : > { %v912_v35 = vpop.f32.mrf.mxu1  ;;  %v1068_v58 = vpop.f32.mrf.mxu0 }
 0x10e   : > { %v948_v59 = vadd.f32 %v912_v35, %v787_v2  ;;  %v2951_v60 = vadd.f32 %v1068_v58, %v947_v53 }
 0x10f   : > { %v2270_v61 = vpop.f32.mrf.mxu1  ;;  %v2296_v62 = vpop.f32.mrf.mxu0 }
 0x111   : > { %v917_v63 = vpop.f32.mrf.mxu1  ;;  %v1073_v0 = vpop.f32.mrf.mxu0 }
 0x112   : > { %v949_v3 = vadd.f32 %v917_v63, %v788_v10  ;;  %v2953_v49 = vadd.f32 %v1073_v0, %v948_v59 }
 0x113   : > { %v2273_v4 = vpop.f32.mrf.mxu1  ;;  %v2299_v5 = vpop.f32.mrf.mxu0 }
 0x115   : > { %v922_v6 = vpop.f32.mrf.mxu1  ;;  %v1078_v57 = vpop.f32.mrf.mxu0 }
 0x116   : > { %v950_v7 = vadd.f32 %v922_v6, %v789_v18  ;;  %v2955_v8 = vadd.f32 %v1078_v57, %v949_v3 }
 0x117   : > { %v2276_v9 = vpop.f32.mrf.mxu1  ;;  %v2302_v11 = vpop.f32.mrf.mxu0 }
 0x119   : > { %v927_v12 = vpop.f32.mrf.mxu1  ;;  %v1083_v2 = vpop.f32.mrf.mxu0 }
 0x11a   : > { %v951_v13 = vadd.f32 %v927_v12, %v790_v28  ;;  %v2957_v14 = vadd.f32 %v1083_v2, %v950_v7 }
 0x11b   : > { %v2279_v15 = vpop.f32.mrf.mxu1  ;;  %v2305_v16 = vpop.f32.mrf.mxu0 }
 0x11d   : > { %v932_v17 = vpop.f32.mrf.mxu1  ;;  %v1088_v10 = vpop.f32.mrf.mxu0 }
 0x11e   : > { %v952_v19 = vadd.f32 %v932_v17, %v791_v36  ;;  %v2959_v20 = vadd.f32 %v1088_v10, %v951_v13 }
 0x11f   : > { %v2282_v21 = vpop.f32.mrf.mxu1  ;;  %v2308_v23 = vpop.f32.mrf.mxu0 }
 0x121   : > { %v937_v24 = vpop.f32.mrf.mxu1  ;;  %v1093_v18 = vpop.f32.mrf.mxu0 }
 0x122   : > { %v953_v25 = vadd.f32 %v937_v24, %v792_v42  ;;  %v2961_v27 = vadd.f32 %v1093_v18, %v952_v19 }
 0x123   : > { %v2285_v29 = vpop.f32.mrf.mxu1  ;;  %v2311_v31 = vpop.f32.mrf.mxu0 }
 0x125   : > { %v942_v32 = vpop.f32.mrf.mxu1  ;;  %v1098_v28 = vpop.f32.mrf.mxu0 }
 0x126   : > { %v954_v33 = vadd.f32 %v942_v32, %v793_v47  ;;  %v2963_v34 = vadd.f32 %v1098_v28, %v953_v25 }
 0x127   : > { %v2288_v22 = vpop.f32.mrf.mxu1  ;;  %v2314_v1 = vpop.f32.mrf.mxu0 }
 0x129   : > { %v1103_v37 = vpop.f32.mrf.mxu0  ;;  %v1223_v36 = vpop.f32.mrf.mxu1 }
 0x12a   : > { %v2965_v38 = vadd.f32 %v1103_v37, %v954_v33  ;;  %v1267_v2 = vadd.f32 %v1223_v36, %v2949_v54 }
 0x12b   : > { %v2317_v39 = vpop.f32.mrf.mxu0  ;;  %v2322_v40 = vpop.f32.mrf.mxu1 }
 0x12d   : > { %v1228_v26 = vpop.f32.mrf.mxu1  ;;  %v1383_v41 = vpop.f32.mrf.mxu0 }
 0x12e   : > { %v1427_v16 = vadd.f32 %v1383_v41, %v1267_v2  ;;  %v1268_v19 = vadd.f32 %v1228_v26, %v2951_v60 }
 0x12f   : > { %v2325_v42 = vpop.f32.mrf.mxu1  ;;  %v2351_v43 = vpop.f32.mrf.mxu0 }
 0x131   : > { %v1233_v44 = vpop.f32.mrf.mxu1  ;;  %v1388_v45 = vpop.f32.mrf.mxu0 }
 0x132   : > { %v1428_v18 = vadd.f32 %v1388_v45, %v1268_v19  ;;  %v1269_v32 = vadd.f32 %v1233_v44, %v2953_v49 }
 0x133   : > { %v2328_v46 = vpop.f32.mrf.mxu1  ;;  %v2354_v48 = vpop.f32.mrf.mxu0 }
 0x135   : > { %v1238_v30 = vpop.f32.mrf.mxu1  ;;  %v1393_v47 = vpop.f32.mrf.mxu0 }
 0x136   : > { %v1429_v22 = vadd.f32 %v1393_v47, %v1269_v32  ;;  %v1270_v60 = vadd.f32 %v1238_v30, %v2955_v8 }
 0x137   : > { %v2331_v50 = vpop.f32.mrf.mxu1  ;;  %v2357_v51 = vpop.f32.mrf.mxu0 }
 0x139   : > { %v1243_v52 = vpop.f32.mrf.mxu1  ;;  %v1398_v53 = vpop.f32.mrf.mxu0 }
 0x13a   : > { %v1430_v26 = vadd.f32 %v1398_v53, %v1270_v60  ;;  %v1271_v45 = vadd.f32 %v1243_v52, %v2957_v14 }
 0x13b   : > { %v2334_v55 = vpop.f32.mrf.mxu1  ;;  %v2360_v56 = vpop.f32.mrf.mxu0 }
 0x13d   : > { %v1248_v35 = vpop.f32.mrf.mxu1  ;;  %v1403_v58 = vpop.f32.mrf.mxu0 }
 0x13e   : > { %v1431_v30 = vadd.f32 %v1403_v58, %v1271_v45  ;;  %v1272_v55 = vadd.f32 %v1248_v35, %v2959_v20 }
 0x13f   : > { %v2337_v59 = vpop.f32.mrf.mxu1  ;;  %v2363_v61 = vpop.f32.mrf.mxu0 }
 0x141   : > { %v2967_v62 = vpop.f32.mrf.mxu1  ;;  %v2969_v63 = vpop.f32.mrf.mxu0 }
 0x142   : > { %v1432_v59 = vadd.f32 %v2969_v63, %v1272_v55 }
 0x143   : > { %v2340_v0 = vpop.f32.mrf.mxu1  ;;  %v2366_v3 = vpop.f32.mrf.mxu0 }
 0x145   : > { %v2971_v4 = vpop.f32.mrf.mxu1  ;;  %v2973_v5 = vpop.f32.mrf.mxu0 }
 0x147   : > { %v2343_v6 = vpop.f32.mrf.mxu1  ;;  %v2369_v57 = vpop.f32.mrf.mxu0 }
 0x148   : > { %v1273_v6 = vadd.f32 %v2967_v62, %v2961_v27 }
 0x149   : > { %v2975_v7 = vpop.f32.mrf.mxu1  ;;  %v2977_v9 = vpop.f32.mrf.mxu0 }
 0x14b   : > { %v2346_v11 = vpop.f32.mrf.mxu1  ;;  %v2372_v12 = vpop.f32.mrf.mxu0 }
 0x14c   : > { %v1433_v11 = vadd.f32 %v2973_v5, %v1273_v6 }
 0x14d   : > { %v2980_v13 = vpop.f32.mrf.mxu0  ;;  %v1543_v15 = vpop.f32.mrf.mxu1 }
 0x14e   : > { %v1587_v21 = vadd.f32 %v1543_v15, %v1427_v16  ;;  %v1274_v16 = vadd.f32 %v2971_v4, %v2963_v34 }
 0x14f   : > { %v2375_v17 = vpop.f32.mrf.mxu0  ;;  %v2380_v10 = vpop.f32.mrf.mxu1 }
 0x150   : > { %v1434_v10 = vadd.f32 %v2977_v9, %v1274_v16 }
 0x151   : > { %v1548_v23 = vpop.f32.mrf.mxu1  ;;  %v1703_v24 = vpop.f32.mrf.mxu0 }
 0x152   : > { %v1747_v25 = vadd.f32 %v1703_v24, %v1587_v21  ;;  %v1588_v28 = vadd.f32 %v1548_v23, %v1428_v18  ;;  %v1275_v24 = vadd.f32 %v2975_v7, %v2965_v38 }
 0x153   : > { %v2383_v29 = vpop.f32.mrf.mxu1  ;;  %v2409_v31 = vpop.f32.mrf.mxu0 }
 0x154   : > { %1756 = vst.msk [vmem:[#allocation2] sm:$0xff] %vm293_vm2, %v1747_v25  ;;  %v1435_v25 = vadd.f32 %v2980_v13, %v1275_v24 }
 0x155   : > { %v1553_v54 = vpop.f32.mrf.mxu1  ;;  %v1708_v33 = vpop.f32.mrf.mxu0 }
 0x156   : > { %v1748_v1 = vadd.f32 %v1708_v33, %v1588_v28  ;;  %v1589_v39 = vadd.f32 %v1553_v54, %v1429_v22 }
 0x157   : > { %v2386_v37 = vpop.f32.mrf.mxu1  ;;  %v2412_v36 = vpop.f32.mrf.mxu0 }
 0x158   : > { %1757 = vst.msk [vmem:[#allocation2 + $0x8] sm:$0xff] %vm293_vm2, %v1748_v1 }
 0x159   : > { %v1558_v49 = vpop.f32.mrf.mxu1  ;;  %v1713_v40 = vpop.f32.mrf.mxu0 }
 0x15a   : > { %v1749_v41 = vadd.f32 %v1713_v40, %v1589_v39  ;;  %v1590_v8 = vadd.f32 %v1558_v49, %v1430_v26 }
 0x15b   : > { %v1768_v42 = vld [vmem:[#allocation2] sm:$0xff]  ;;  %v2389_v43 = vpop.f32.mrf.mxu1  ;;  %v2415_v44 = vpop.f32.mrf.mxu0 }
 0x15c   : > { %1777 = vst.msk [vmem:[%s2991_s20] sm:$0xff] %vm293_vm2, %v1768_v42  ;;  %1758 = vst.msk [vmem:[#allocation2 + $0x10] sm:$0xff] %vm293_vm2, %v1749_v41 }
 0x15d   : > { %v1563_v46 = vpop.f32.mrf.mxu1  ;;  %v1718_v48 = vpop.f32.mrf.mxu0 }
 0x15e   : > { %v1750_v47 = vadd.f32 %v1718_v48, %v1590_v8  ;;  %v1591_v56 = vadd.f32 %v1563_v46, %v1431_v30 }
 0x15f   : > { %v1769_v50 = vld [vmem:[#allocation2 + $0x8] sm:$0xff]  ;;  %v2392_v51 = vpop.f32.mrf.mxu1  ;;  %v2418_v53 = vpop.f32.mrf.mxu0 }
 0x160   : > { %1778 = vst.msk [vmem:[%s2991_s20 + $0x8] sm:$0xff] %vm293_vm2, %v1769_v50  ;;  %1759 = vst.msk [vmem:[#allocation2 + $0x18] sm:$0xff] %vm293_vm2, %v1750_v47 }
 0x161   : > { %v1568_v14 = vpop.f32.mrf.mxu1  ;;  %v1723_v52 = vpop.f32.mrf.mxu0 }
 0x162   : > { %v1751_v61 = vadd.f32 %v1723_v52, %v1591_v56  ;;  %v1592_v20 = vadd.f32 %v1568_v14, %v1432_v59 }
 0x163   : > { %v1770_v0 = vld [vmem:[#allocation2 + $0x10] sm:$0xff]  ;;  %v2395_v58 = vpop.f32.mrf.mxu1  ;;  %v2421_v3 = vpop.f32.mrf.mxu0 }
 0x164   : > { %1779 = vst.msk [vmem:[%s2991_s20 + $0x10] sm:$0xff] %vm293_vm2, %v1770_v0  ;;  %1760 = vst.msk [vmem:[#allocation2 + $0x20] sm:$0xff] %vm293_vm2, %v1751_v61 }
 0x165   : > { %v1573_v35 = vpop.f32.mrf.mxu1  ;;  %v1728_v57 = vpop.f32.mrf.mxu0 }
 0x166   : > { %v1752_v12 = vadd.f32 %v1728_v57, %v1592_v20  ;;  %v1593_v27 = vadd.f32 %v1573_v35, %v1433_v11 }
 0x167   : > { %v1771_v63 = vld [vmem:[#allocation2 + $0x18] sm:$0xff]  ;;  %v2398_v2 = vpop.f32.mrf.mxu1  ;;  %v2424_v15 = vpop.f32.mrf.mxu0 }
 0x168   : > { %1780 = vst.msk [vmem:[%s2991_s20 + $0x18] sm:$0xff] %vm293_vm2, %v1771_v63  ;;  %1761 = vst.msk [vmem:[#allocation2 + $0x28] sm:$0xff] %vm293_vm2, %v1752_v12 }
 0x169   : > { %v1578_v62 = vpop.f32.mrf.mxu1  ;;  %v1733_v17 = vpop.f32.mrf.mxu0 }
 0x16a   : > { %v1753_v19 = vadd.f32 %v1733_v17, %v1593_v27  ;;  %v1594_v34 = vadd.f32 %v1578_v62, %v1434_v10 }
 0x16b   : > { %v1772_v5 = vld [vmem:[#allocation2 + $0x20] sm:$0xff]  ;;  %v2401_v21 = vpop.f32.mrf.mxu1  ;;  %v2427_v23 = vpop.f32.mrf.mxu0 }
 0x16c   : > { %1781 = vst.msk [vmem:[%s2991_s20 + $0x20] sm:$0xff] %vm293_vm2, %v1772_v5  ;;  %1762 = vst.msk [vmem:[#allocation2 + $0x30] sm:$0xff] %vm293_vm2, %v1753_v19 }
 0x16d   : > { %v1583_v4 = vpop.f32.mrf.mxu1  ;;  %v1738_v18 = vpop.f32.mrf.mxu0 }
 0x16e   : > { %v1754_v9 = vadd.f32 %v1738_v18, %v1594_v34  ;;  %v1595_v28 = vadd.f32 %v1583_v4, %v1435_v25 }
 0x16f   : > { %v1773_v29 = vld [vmem:[#allocation2 + $0x28] sm:$0xff]  ;;  %v2404_v31 = vpop.f32.mrf.mxu1  ;;  %v2430_v32 = vpop.f32.mrf.mxu0 }
 0x170   : > { %1782 = vst.msk [vmem:[%s2991_s20 + $0x28] sm:$0xff] %vm293_vm2, %v1773_v29  ;;  %1763 = vst.msk [vmem:[#allocation2 + $0x38] sm:$0xff] %vm293_vm2, %v1754_v9 }
 0x171   : > { %v1743_v38 = vpop.f32.mrf.mxu0 }
 0x172   : > { %v1755_v7 = vadd.f32 %v1743_v38, %v1595_v28 }
 0x173   : > { %v1774_v54 = vld [vmem:[#allocation2 + $0x30] sm:$0xff]  ;;  %v2433_v33 = vpop.f32.mrf.mxu0 }
 0x174   : > { %1783 = vst.msk [vmem:[%s2991_s20 + $0x30] sm:$0xff] %vm293_vm2, %v1774_v54  ;;  %1764 = vst.msk [vmem:[#allocation2 + $0x40] sm:$0xff] %vm293_vm2, %v1755_v7 }
 0x177   : > { %v1775_v22 = vld [vmem:[#allocation2 + $0x38] sm:$0xff] }
 0x178   : > { %1784 = vst.msk [vmem:[%s2991_s20 + $0x38] sm:$0xff] %vm293_vm2, %v1775_v22 }
 0x17b   : > { %v1776_v13 = vld [vmem:[#allocation2 + $0x40] sm:$0xff] }
 0x17c   : > { %1785 = vst.msk [vmem:[%s2991_s20 + $0x40] sm:$0xff] %vm293_vm2, %v1776_v13 }
 0x17d PF: > { %s13_s14 = sadd.s32 1, %s2486_s14   ;;  %s3043_s12 = smov %s2482_s13 }
 0x17e   : > { %p10_p5 = scmp.ge.s32.totalorder %s13_s14, 4   ;;  %s3044_s13 = smov %s3046_s15 }
 0x180   :  { %12 = sbr.rel (!%p10_p5) target bundleno = 2 (0x2), region = 87 }

</bundles_post_ra>
